<compile_context>
chip_gen: v7x
topology: tpu7x:2x2x1
jax: 0.10.0
libtpu: 0.0.40
codegen_flags: <defaults>
</compile_context>

<pallas_src>
import jax
import jax.numpy as jnp
from jax.experimental import pallas as pl
from jax.experimental.pallas import tpu as pltpu


def rnn_kernel(x_ref, w_ih_ref, b_ref, w_hh_ref, w_ho_ref, b_ho_ref, out_ref):
    # x_ref: (T*B, I) time-major flattened input
    # b_ref: (1, H) fused recurrence bias (b_ih + b_hh)
    # w_ho_ref / b_ho_ref / out_ref: lane-padded to O_pad (multiple of 128)
    TB, _ = x_ref.shape
    B = out_ref.shape[0]
    T = TB // B
    H = w_hh_ref.shape[0]

    # Hoisted input projection: ONE MXU matmul over all time steps + fused bias,
    # outside the serial h -> W_hh -> tanh -> h dependency chain.
    x_proj = (
        jnp.dot(x_ref[...], w_ih_ref[...], preferred_element_type=jnp.float32)
        + b_ref[...]
    )  # (T*B, H)

    w_hh = w_hh_ref[...]

    # Hidden state stays in vregs; loop is static & fully unrolled (T is small),
    # so the scheduler sees the entire recurrence. Per-step slice is a static,
    # sublane-aligned (B, H) block of x_proj.
    h = jnp.zeros((B, H), jnp.float32)
    for t in range(T):
        xt = x_proj[t * B:(t + 1) * B, :]
        h = jnp.tanh(xt + jnp.dot(h, w_hh, preferred_element_type=jnp.float32))

    out = (
        jnp.dot(h, w_ho_ref[...], preferred_element_type=jnp.float32)
        + b_ho_ref[...]
    )
    out_ref[...] = out.astype(out_ref.dtype)


def simple_rnn_forward(x, w_ih, b_ih, w_hh, b_hh, w_ho, b_ho):
    """x: (B, T, I). Weights stored pre-transposed: w_* is (in, out), b_* is (out,)."""
    B, T, I = x.shape
    H = w_ih.shape[1]
    O = w_ho.shape[1]
    O_pad = max(128, ((O + 127) // 128) * 128)  # lane-dense output width

    # Layout plumbing in the wrapper (tiny arrays, free):
    x_tm = jnp.transpose(x, (1, 0, 2)).reshape(T * B, I)      # time-major, flat
    b_fused = (b_ih + b_hh).reshape(1, H)                     # fold both biases
    w_ho_p = jnp.zeros((H, O_pad), w_ho.dtype).at[:, :O].set(w_ho)
    b_ho_p = jnp.zeros((1, O_pad), b_ho.dtype).at[0, :O].set(b_ho)

    out_p = pl.pallas_call(
        rnn_kernel,
        out_shape=jax.ShapeDtypeStruct((B, O_pad), jnp.float32),
        in_specs=[pl.BlockSpec(memory_space=pltpu.MemorySpace.VMEM)] * 6,
        out_specs=pl.BlockSpec(memory_space=pltpu.MemorySpace.VMEM),
    )(x_tm, w_ih, b_fused, w_hh, w_ho_p, b_ho_p)

    return out_p[:, :O].astype(x.dtype)


def reference_forward(x, w_ih, b_ih, w_hh, b_hh, w_ho, b_ho):
    B, T, _ = x.shape
    H = w_ih.shape[1]
    h = jnp.zeros((B, H), dtype=jnp.float32)
    for t in range(T):
        h = jnp.tanh(x[:, t, :] @ w_ih + b_ih + h @ w_hh + b_hh)
    return h @ w_ho + b_ho


if __name__ == "__main__":
    input_size = 28
    hidden_size = 128
    output_size = 10
    batch = 8
    seq = 8

    key = jax.random.PRNGKey(0)
    k = jax.random.split(key, 7)

    x = jax.random.normal(k[0], (batch, seq, input_size), dtype=jnp.float32)

    # Deterministic parameter init (shapes match nn.Linear, stored transposed).
    w_ih = jax.random.normal(k[1], (input_size, hidden_size), jnp.float32) * 0.1
    b_ih = jax.random.normal(k[2], (hidden_size,), jnp.float32) * 0.1
    w_hh = jax.random.normal(k[3], (hidden_size, hidden_size), jnp.float32) * 0.1
    b_hh = jax.random.normal(k[4], (hidden_size,), jnp.float32) * 0.1
    w_ho = jax.random.normal(k[5], (hidden_size, output_size), jnp.float32) * 0.1
    b_ho = jax.random.normal(k[6], (output_size,), jnp.float32) * 0.1

    out = simple_rnn_forward(x, w_ih, b_ih, w_hh, b_hh, w_ho, b_ho)
    out = jax.block_until_ready(out)

    ref = reference_forward(x, w_ih, b_ih, w_hh, b_hh, w_ho, b_ho)
    assert out.shape == (batch, output_size)
    assert jnp.allclose(out, ref, atol=1e-4, rtol=1e-4)

    print("KERNEL_OK")
</pallas_src>

<mosaic_0001>
module attributes {stable_mosaic.version = 11 : i64} {
  func.func @rnn_kernel(%arg0: memref<64x28xf32, #tpu.memory_space<vmem>>, %arg1: memref<28x128xf32, #tpu.memory_space<vmem>>, %arg2: memref<1x128xf32, #tpu.memory_space<vmem>>, %arg3: memref<128x128xf32, #tpu.memory_space<vmem>>, %arg4: memref<128x128xf32, #tpu.memory_space<vmem>>, %arg5: memref<1x128xf32, #tpu.memory_space<vmem>>, %arg6: memref<8x128xf32, #tpu.memory_space<vmem>>) attributes {dimension_semantics = [], scalar_prefetch = 0 : i64, scratch_operands = 0 : i64, tpu.core_type = #tpu.core_type<tc>} {
    %c0 = arith.constant 0 : index
    %c0_0 = arith.constant 0 : index
    %0 = vector.load %arg0[%c0, %c0_0] : memref<64x28xf32, #tpu.memory_space<vmem>>, vector<64x28xf32>
    %c0_1 = arith.constant 0 : index
    %c0_2 = arith.constant 0 : index
    %1 = vector.load %arg1[%c0_1, %c0_2] : memref<28x128xf32, #tpu.memory_space<vmem>>, vector<28x128xf32>
    %cst = arith.constant dense<0.000000e+00> : vector<64x128xf32>
    %2 = tpu.matmul %0, %1, %cst {dimension_numbers = #tpu.dot_dimension_numbers<[1], [0], [0], [1], [0, 0, 1, 1], [], []>} : vector<64x28xf32>, vector<28x128xf32>, vector<64x128xf32> -> vector<64x128xf32>
    %c0_3 = arith.constant 0 : index
    %c0_4 = arith.constant 0 : index
    %3 = vector.load %arg2[%c0_3, %c0_4] : memref<1x128xf32, #tpu.memory_space<vmem>>, vector<1x128xf32>
    %4 = vector.broadcast %3 : vector<1x128xf32> to vector<64x128xf32>
    %5 = arith.addf %2, %4 : vector<64x128xf32>
    %c0_5 = arith.constant 0 : index
    %c0_6 = arith.constant 0 : index
    %6 = vector.load %arg3[%c0_5, %c0_6] : memref<128x128xf32, #tpu.memory_space<vmem>>, vector<128x128xf32>
    %cst_7 = arith.constant 0.000000e+00 : f32
    %7 = vector.broadcast %cst_7 : f32 to vector<8x128xf32>
    %8 = vector.extract_strided_slice %5 {offsets = [0, 0], sizes = [8, 128], strides = [1, 1]} : vector<64x128xf32> to vector<8x128xf32>
    %cst_8 = arith.constant dense<0.000000e+00> : vector<8x128xf32>
    %9 = tpu.matmul %7, %6, %cst_8 {dimension_numbers = #tpu.dot_dimension_numbers<[1], [0], [0], [1], [0, 0, 1, 1], [], []>} : vector<8x128xf32>, vector<128x128xf32>, vector<8x128xf32> -> vector<8x128xf32>
    %10 = arith.addf %8, %9 : vector<8x128xf32>
    %11 = math.tanh %10 : vector<8x128xf32>
    %12 = vector.extract_strided_slice %5 {offsets = [8, 0], sizes = [8, 128], strides = [1, 1]} : vector<64x128xf32> to vector<8x128xf32>
    %cst_9 = arith.constant dense<0.000000e+00> : vector<8x128xf32>
    %13 = tpu.matmul %11, %6, %cst_9 {dimension_numbers = #tpu.dot_dimension_numbers<[1], [0], [0], [1], [0, 0, 1, 1], [], []>} : vector<8x128xf32>, vector<128x128xf32>, vector<8x128xf32> -> vector<8x128xf32>
    %14 = arith.addf %12, %13 : vector<8x128xf32>
    %15 = math.tanh %14 : vector<8x128xf32>
    %16 = vector.extract_strided_slice %5 {offsets = [16, 0], sizes = [8, 128], strides = [1, 1]} : vector<64x128xf32> to vector<8x128xf32>
    %cst_10 = arith.constant dense<0.000000e+00> : vector<8x128xf32>
    %17 = tpu.matmul %15, %6, %cst_10 {dimension_numbers = #tpu.dot_dimension_numbers<[1], [0], [0], [1], [0, 0, 1, 1], [], []>} : vector<8x128xf32>, vector<128x128xf32>, vector<8x128xf32> -> vector<8x128xf32>
    %18 = arith.addf %16, %17 : vector<8x128xf32>
    %19 = math.tanh %18 : vector<8x128xf32>
    %20 = vector.extract_strided_slice %5 {offsets = [24, 0], sizes = [8, 128], strides = [1, 1]} : vector<64x128xf32> to vector<8x128xf32>
    %cst_11 = arith.constant dense<0.000000e+00> : vector<8x128xf32>
    %21 = tpu.matmul %19, %6, %cst_11 {dimension_numbers = #tpu.dot_dimension_numbers<[1], [0], [0], [1], [0, 0, 1, 1], [], []>} : vector<8x128xf32>, vector<128x128xf32>, vector<8x128xf32> -> vector<8x128xf32>
    %22 = arith.addf %20, %21 : vector<8x128xf32>
    %23 = math.tanh %22 : vector<8x128xf32>
    %24 = vector.extract_strided_slice %5 {offsets = [32, 0], sizes = [8, 128], strides = [1, 1]} : vector<64x128xf32> to vector<8x128xf32>
    %cst_12 = arith.constant dense<0.000000e+00> : vector<8x128xf32>
    %25 = tpu.matmul %23, %6, %cst_12 {dimension_numbers = #tpu.dot_dimension_numbers<[1], [0], [0], [1], [0, 0, 1, 1], [], []>} : vector<8x128xf32>, vector<128x128xf32>, vector<8x128xf32> -> vector<8x128xf32>
    %26 = arith.addf %24, %25 : vector<8x128xf32>
    %27 = math.tanh %26 : vector<8x128xf32>
    %28 = vector.extract_strided_slice %5 {offsets = [40, 0], sizes = [8, 128], strides = [1, 1]} : vector<64x128xf32> to vector<8x128xf32>
    %cst_13 = arith.constant dense<0.000000e+00> : vector<8x128xf32>
    %29 = tpu.matmul %27, %6, %cst_13 {dimension_numbers = #tpu.dot_dimension_numbers<[1], [0], [0], [1], [0, 0, 1, 1], [], []>} : vector<8x128xf32>, vector<128x128xf32>, vector<8x128xf32> -> vector<8x128xf32>
    %30 = arith.addf %28, %29 : vector<8x128xf32>
    %31 = math.tanh %30 : vector<8x128xf32>
    %32 = vector.extract_strided_slice %5 {offsets = [48, 0], sizes = [8, 128], strides = [1, 1]} : vector<64x128xf32> to vector<8x128xf32>
    %cst_14 = arith.constant dense<0.000000e+00> : vector<8x128xf32>
    %33 = tpu.matmul %31, %6, %cst_14 {dimension_numbers = #tpu.dot_dimension_numbers<[1], [0], [0], [1], [0, 0, 1, 1], [], []>} : vector<8x128xf32>, vector<128x128xf32>, vector<8x128xf32> -> vector<8x128xf32>
    %34 = arith.addf %32, %33 : vector<8x128xf32>
    %35 = math.tanh %34 : vector<8x128xf32>
    %36 = vector.extract_strided_slice %5 {offsets = [56, 0], sizes = [8, 128], strides = [1, 1]} : vector<64x128xf32> to vector<8x128xf32>
    %cst_15 = arith.constant dense<0.000000e+00> : vector<8x128xf32>
    %37 = tpu.matmul %35, %6, %cst_15 {dimension_numbers = #tpu.dot_dimension_numbers<[1], [0], [0], [1], [0, 0, 1, 1], [], []>} : vector<8x128xf32>, vector<128x128xf32>, vector<8x128xf32> -> vector<8x128xf32>
    %38 = arith.addf %36, %37 : vector<8x128xf32>
    %39 = math.tanh %38 : vector<8x128xf32>
    %c0_16 = arith.constant 0 : index
    %c0_17 = arith.constant 0 : index
    %40 = vector.load %arg4[%c0_16, %c0_17] : memref<128x128xf32, #tpu.memory_space<vmem>>, vector<128x128xf32>
    %cst_18 = arith.constant dense<0.000000e+00> : vector<8x128xf32>
    %41 = tpu.matmul %39, %40, %cst_18 {dimension_numbers = #tpu.dot_dimension_numbers<[1], [0], [0], [1], [0, 0, 1, 1], [], []>} : vector<8x128xf32>, vector<128x128xf32>, vector<8x128xf32> -> vector<8x128xf32>
    %c0_19 = arith.constant 0 : index
    %c0_20 = arith.constant 0 : index
    %42 = vector.load %arg5[%c0_19, %c0_20] : memref<1x128xf32, #tpu.memory_space<vmem>>, vector<1x128xf32>
    %43 = vector.broadcast %42 : vector<1x128xf32> to vector<8x128xf32>
    %44 = arith.addf %41, %43 : vector<8x128xf32>
    %c0_21 = arith.constant 0 : index
    %c0_22 = arith.constant 0 : index
    %45 = vector.load %arg6[%c0_21, %c0_22] : memref<8x128xf32, #tpu.memory_space<vmem>>, vector<8x128xf32>
    tpu.vector_store %arg6[%c0_21, %c0_22], %44 {strides = array<i32>} : memref<8x128xf32, #tpu.memory_space<vmem>>, vector<8x128xf32>,
    return
  }
}

</mosaic_0001>

<bundles_post_ra>
// kernel: tpu_custom_call.1
= control target key start
LH: loop header
LB: loop body
LE: loop exit
PB: predicated region body
PF: predicated region fallthrough
CT: control target
= control target key end

     0   :  { %11 = vsyncpa [#allocation3], 0  ;;  %s2064_s0 = inlined_call_operand.vmem [shape: f32[64,28], index: 0, kind: input, shape index: {}]   ;;  %s2065_s1 = inlined_call_operand.vmem [shape: f32[28,128], index: 1, kind: input, shape index: {}]   ;;  %s2066_s2 = inlined_call_operand.vmem [shape: f32[1,128], index: 2, kind: input, shape index: {}]   ;;  %s2067_s3 = inlined_call_operand.hbm [shape: f32[128,128], index: 3, kind: input, shape index: {}]   ;;  %s2068_s4 = inlined_call_operand.hbm [shape: f32[128,128], index: 4, kind: input, shape index: {}]   ;;  %s2069_s5 = inlined_call_operand.vmem [shape: f32[1,128], index: 5, kind: input, shape index: {}]   ;;  %s2070_s6 = inlined_call_operand.hbm [shape: f32[8,128], index: 6, kind: output, shape index: {}]  }
   0x1   :  { %12 = vsyncpa [#allocation6], 0 }
   0x2   :  { %13 = vsyncpa [#allocation4], 0  ;;  %s1741_s21 = smov [#allocation2]   ;;  %s1669_s25 = scalar_lea.hbm %s2067_s3, 2048 }
   0x3   :  { %s25_s22 = sshll.u32 %s1741_s21, 4  ;;  %p1670_p0 = scmp.ne.s32.totalorder %s2067_s3, %s1669_s25  ;;  %s26_s22 = int_to_ptr.vmem [resolvable:$true] %s25_s22 }
   0x4   :  { %p1673_p1 = scmp.lt.u32.totalorder %s1669_s25, %s2067_s3 }
   0x6   :  { %p1675_p2 = pnand %p1673_p1, %p1670_p0 }
   0x8   :  { %1678 = shalt.err (!%p1675_p2)
}
   0x9   :  { %s1679_s30 = scalar_lea.vmem %s26_s22, 2048  ;;  %p1684_p4 = scmp.lt.s32.totalorder %s26_s22, %s26_s22 }
   0xa   :  { %p1680_p3 = scmp.ne.s32.totalorder %s26_s22, %s1679_s30  ;;  %p1685_p5 = scmp.lt.s32.totalorder %s1679_s30, %s1679_s30 }
   0xc   :  { %p1686_p6 = por %p1685_p5, %p1684_p4 }
   0xe   :  { %p1687_p7 = pnand %p1686_p6, %p1680_p3 }
  0x10   :  { %1690 = shalt.err (!%p1687_p7)
}
  0x11   :  { %s1742_s7 = smov 128   ;;  %s1743_s8 = smov 8  }
  0x12   :  { %31 = dma.hbm_to_vmem [thread:$0]  %s2067_s3, 2048, %s26_s22, [#allocation3], %s1742_s7, %s1742_s7, %s1743_s8  }
  0x13   :  { %s1744_s11 = smov [#allocation5]   ;;  %s1691_s15 = scalar_lea.hbm %s2068_s4, 2048 }
  0x14   :  { %s37_s12 = sshll.u32 %s1744_s11, 4  ;;  %p1692_p8 = scmp.ne.s32.totalorder %s2068_s4, %s1691_s15  ;;  %s38_s12 = int_to_ptr.vmem [resolvable:$true] %s37_s12 }
  0x15   :  { %p1695_p9 = scmp.lt.u32.totalorder %s1691_s15, %s2068_s4 }
  0x17   :  { %p1697_p10 = pnand %p1695_p9, %p1692_p8 }
  0x19   :  { %1700 = shalt.err (!%p1697_p10)
}
  0x1a   :  { %s1701_s20 = scalar_lea.vmem %s38_s12, 2048  ;;  %p1706_p12 = scmp.lt.s32.totalorder %s38_s12, %s38_s12 }
  0x1b   :  { %p1702_p11 = scmp.ne.s32.totalorder %s38_s12, %s1701_s20  ;;  %p1707_p13 = scmp.lt.s32.totalorder %s1701_s20, %s1701_s20 }
  0x1d   :  { %p1708_p0 = por %p1707_p13, %p1706_p12 }
  0x1f   :  { %p1709_p1 = pnand %p1708_p0, %p1702_p11 }
  0x21   :  { %1712 = shalt.err (!%p1709_p1)
}
  0x22   :  { %43 = dma.hbm_to_vmem [thread:$0]  %s2068_s4, 2048, %s38_s12, [#allocation6], %s1742_s7, %s1742_s7, %s1743_s8  }
  0x23   :  { %1735 = dma.done.wait [#allocation3], 2048  }
  0x24   :  { %1736 = vsyncadd [#allocation3], 4294965248 }
  0x25   :  { %1737 = dma.done.wait [#allocation6], 2048  }
  0x26   :  { %1738 = vsyncadd [#allocation6], 4294965248  ;;  %v1745_v0 = vmov 0.0|0.0   ;;  %vm1746_vm0 = vmmov 0   ;;  %v1747_v1 = vmov 0.0   ;;  %v205_v2 = vld [vmem:[#allocation2] sm:$0xff] }
  0x27   :  { %1428 = vmatprep.subr.bf16.mxu1 %v1745_v0  ;;  %1135 = vmatprep.mubr.msk.f32.mxu1 %vm1746_vm0, %v1747_v1  ;;  %v206_v3 = vld [vmem:[#allocation2 + $0x8] sm:$0xff]  ;;  %v207_v4 = vld [vmem:[#allocation2 + $0x10] sm:$0xff]  ;;  %v208_v6 = vld [vmem:[#allocation2 + $0x18] sm:$0xff]  ;;  %vm96_vm1 = vcmask 1043456   ;;  %vm1748_vm2 = vmmov 1   ;;  %vm71_vm4 = vcmask 228352  }
  0x28   :  { %v1812_v5 = vpack.c.bf16 %v206_v3, %v205_v2  ;;  %v1815_v7 = vpack.c.bf16 %v208_v6, %v207_v4  ;;  %v60_v8 = vld [vmem:[%s2065_s1] sm:$0xff]  ;;  %v61_v9 = vld [vmem:[%s2065_s1 + $0x8] sm:$0xff]  ;;  %v62_v13 = vld [vmem:[%s2065_s1 + $0x10] sm:$0xff]  ;;  %s1749_s21 = smov [#allocation7]  }
  0x29   :  { %v209_v10 = vld [vmem:[#allocation2 + $0x20] sm:$0xff]  ;;  %v210_v11 = vld [vmem:[#allocation2 + $0x28] sm:$0xff]  ;;  %v1418_v12 = vpack.c.bf16 %v61_v9, %v60_v8  ;;  %v63_v14 = vld [vmem:[%s2065_s1 + $0x18] sm:$0xf]  ;;  %s897_s4 = sshll.u32 %s1749_s21, 4  ;;  %s898_s4 = int_to_ptr.vmem [resolvable:$true] %s897_s4 }
  0x2a   :  { %1430 = vmatpush3.bf16.msra.mxu1 %v1812_v5  ;;  %vm1423_vm3 = vmpackc.low %vm96_vm1, %vm1748_vm2  ;;  %v1422_v15 = vpack.c.bf16 %v63_v14, %v62_v13  ;;  %v52_v16 = vld [vmem:[%s2064_s0] sm:$0xff]  ;;  %v1834_v17 = vpack.c.bf16 %v210_v11, %v209_v10  ;;  %v211_v18 = vld [vmem:[#allocation2 + $0x30] sm:$0xff]  ;;  %s1713_s22 = scalar_lea.vmem %s898_s4, 128  ;;  %p1718_p3 = scmp.lt.s32.totalorder %s898_s4, %s898_s4 }
  0x2b   :  { %1431 = vmatprep.subr.bf16.mxu1 %v1745_v0  ;;  %1419 = vmatprep.subr.bf16.mxu0 %v1418_v12  ;;  %v212_v19 = vld [vmem:[#allocation2 + $0x38] sm:$0xff]  ;;  %v53_v21 = vld [vmem:[%s2064_s0 + $0x8] sm:$0xff]  ;;  %v213_v22 = vld [vmem:[#allocation2 + $0x40] sm:$0xff]  ;;  %p1714_p2 = scmp.ne.s32.totalorder %s898_s4, %s1713_s22  ;;  %p1719_p4 = scmp.lt.s32.totalorder %s1713_s22, %s1713_s22 }
  0x2c   :  { %1421 = vmatpush3.bf16.msra.mxu0 %v1418_v12  ;;  %1091 = vmatprep.mubr.msk.f32.mxu0 %vm71_vm4, %v52_v16  ;;  %v1839_v20 = vpack.c.bf16 %v212_v19, %v211_v18  ;;  %v214_v23 = vld [vmem:[#allocation2 + $0x48] sm:$0xff]  ;;  %v215_v25 = vld [vmem:[#allocation2 + $0x50] sm:$0xff]  ;;  %v216_v26 = vld [vmem:[#allocation2 + $0x58] sm:$0xff] }
  0x2d   :  { %1424 = vmatprep.subr.msk.bf16.mxu0 %vm1423_vm3, %v1422_v15  ;;  %v1848_v24 = vpack.c.bf16 %v214_v23, %v213_v22  ;;  %v1854_v27 = vpack.c.bf16 %v216_v26, %v215_v25  ;;  %v217_v28 = vld [vmem:[#allocation2 + $0x60] sm:$0xff]  ;;  %v218_v29 = vld [vmem:[#allocation2 + $0x68] sm:$0xff]  ;;  %v219_v31 = vld [vmem:[#allocation2 + $0x70] sm:$0xff]  ;;  %p1720_p5 = por %p1719_p4, %p1718_p3 }
  0x2e   :  { %1433 = vmatpush3.bf16.msra.mxu1 %v1815_v7  ;;  %v1860_v30 = vpack.c.bf16 %v218_v29, %v217_v28  ;;  %v220_v32 = vld [vmem:[#allocation2 + $0x78] sm:$0xff]  ;;  %v54_v34 = vld [vmem:[%s2064_s0 + $0x10] sm:$0xff]  ;;  %v56_v36 = vld [vmem:[%s2064_s0 + $0x20] sm:$0xff] }
  0x2f   :  { %1434 = vmatprep.subr.bf16.mxu1 %v1745_v0  ;;  %v1866_v33 = vpack.c.bf16 %v220_v32, %v219_v31  ;;  %v55_v35 = vld [vmem:[%s2064_s0 + $0x18] sm:$0xff]  ;;  %v57_v37 = vld [vmem:[%s2064_s0 + $0x28] sm:$0xff]  ;;  %v58_v38 = vld [vmem:[%s2064_s0 + $0x30] sm:$0xff]  ;;  %p1721_p6 = pnand %p1720_p5, %p1714_p2 }
  0x30   :  { %1427 = vmatpush3.bf16.msk.msra.mxu0 %vm1423_vm3, %v1422_v15  ;;  %v59_v39 = vld [vmem:[%s2064_s0 + $0x38] sm:$0xff]  ;;  %v1929_v42 = vld [vmem:[%s2066_s2] ss:$0 sm:$0xff]  ;;  %v798_v18 = vld [vmem:[#allocation5 + $0x8] sm:$0xff] }
  0x31   :  { %1452 = vmatprep.subr.bf16.mxu0 %v1745_v0  ;;  %v799_v19 = vld [vmem:[#allocation5 + $0x10] sm:$0xff]  ;;  %v801_v23 = vld [vmem:[#allocation5 + $0x20] sm:$0xff]  ;;  %v806_v29 = vld [vmem:[#allocation5 + $0x48] sm:$0xff] }
  0x32   :  { %1436 = vmatpush3.bf16.msra.mxu1 %v1834_v17  ;;  %v803_v26 = vld [vmem:[#allocation5 + $0x30] sm:$0xff] }
  0x33   :  { %1437 = vmatprep.subr.bf16.mxu1 %v1745_v0  ;;  %1092 = vmatmul.mubr.msk.f32.vlgmr.msra.gmra.mrb[0].mxu0 %vm71_vm4, %v53_v21  ;;  %v800_v21 = vld [vmem:[#allocation5 + $0x18] sm:$0xff] }
  0x34   :  { %1454 = vmatpush3.bf16.msra.mxu0 %v1812_v5  ;;  %1094 = vmatprep.mubr.msk.f32.mxu0 %vm71_vm4, %v54_v34  ;;  %v1624_v22 = vpack.c.bf16 %v800_v21, %v799_v19 }
  0x35   :  { %1455 = vmatprep.subr.bf16.mxu0 %v1745_v0 }
  0x36   :  { %1439 = vmatpush3.bf16.msra.mxu1 %v1839_v20 }
  0x37   :  { %1440 = vmatprep.subr.bf16.mxu1 %v1745_v0  ;;  %1095 = vmatmul.mubr.msk.f32.gmra.mrb[2].mxu0 %vm71_vm4, %v55_v35 }
  0x38   :  { %1457 = vmatpush3.bf16.msra.mxu0 %v1815_v7  ;;  %1097 = vmatprep.mubr.msk.f32.mxu0 %vm71_vm4, %v56_v36  ;;  %v807_v36 = vld [vmem:[#allocation5 + $0x50] sm:$0xff] }
  0x39   :  { %1458 = vmatprep.subr.bf16.mxu0 %v1745_v0 }
  0x3a   :  { %1442 = vmatpush3.bf16.msra.mxu1 %v1848_v24 }
  0x3b   :  { %1443 = vmatprep.subr.bf16.mxu1 %v1745_v0  ;;  %1098 = vmatmul.mubr.msk.f32.gmra.mrb[4].mxu0 %vm71_vm4, %v57_v37  ;;  %v808_v37 = vld [vmem:[#allocation5 + $0x58] sm:$0xff] }
  0x3c   :  { %1460 = vmatpush3.bf16.msra.mxu0 %v1834_v17  ;;  %1100 = vmatprep.mubr.msk.f32.mxu0 %vm71_vm4, %v58_v38  ;;  %v1636_v38 = vpack.c.bf16 %v808_v37, %v807_v36 }
  0x3d   :  { %1461 = vmatprep.subr.bf16.mxu0 %v1745_v0 }
  0x3e   :  { %1445 = vmatpush3.bf16.msra.mxu1 %v1854_v27 }
  0x3f   :  { %1446 = vmatprep.subr.bf16.mxu1 %v1745_v0  ;;  %1101 = vmatmul.mubr.msk.f32.gmra.mrb[6].mxu0 %vm71_vm4, %v59_v39  ;;  %v809_v39 = vld [vmem:[#allocation5 + $0x60] sm:$0xff] }
  0x40   :  { %1463 = vmatpush3.bf16.msra.mxu0 %v1839_v20  ;;  %1170 = vmatprep.mubr.msk.f32.mxu0 %vm1746_vm0, %v1747_v1 }
  0x41   :  { %1464 = vmatprep.subr.bf16.mxu0 %v1745_v0 }
  0x42   :  { %1448 = vmatpush3.bf16.msra.mxu1 %v1860_v30 }
  0x43   :  { %1449 = vmatprep.subr.bf16.mxu1 %v1745_v0 }
  0x44   :  { %1466 = vmatpush3.bf16.msra.mxu0 %v1848_v24 }
  0x45   :  { %1467 = vmatprep.subr.bf16.mxu0 %v1745_v0 }
  0x46   :  { %1451 = vmatpush3.bf16.msra.mxu1 %v1866_v33 }
  0x47   :  { %1476 = vmatprep.subr.bf16.mxu1 %v1745_v0 }
  0x48   :  { %1469 = vmatpush3.bf16.msra.mxu0 %v1854_v27 }
  0x49   :  { %1136 = vmatmul.mubr.f32.vlgmr.msra.gmra.mrb[0].mxu1 %v1747_v1  ;;  %1470 = vmatprep.subr.bf16.mxu0 %v1745_v0 }
  0x4a   :  { %1478 = vmatpush3.bf16.msra.mxu1 %v1812_v5  ;;  %1205 = vmatprep.mubr.msk.f32.mxu1 %vm1746_vm0, %v1747_v1 }
  0x4b   :  { %1479 = vmatprep.subr.bf16.mxu1 %v1745_v0 }
  0x4c   :  { %1472 = vmatpush3.bf16.msra.mxu0 %v1860_v30 }
  0x4d   :  { %1473 = vmatprep.subr.bf16.mxu0 %v1745_v0 }
  0x4e   :  { %1481 = vmatpush3.bf16.msra.mxu1 %v1815_v7 }
  0x4f   :  { %1482 = vmatprep.subr.bf16.mxu1 %v1745_v0 }
  0x50   :  { %1475 = vmatpush3.bf16.msra.mxu0 %v1866_v33 }
  0x51   :  { %1500 = vmatprep.subr.bf16.mxu0 %v1745_v0 }
  0x52   :  { %1484 = vmatpush3.bf16.msra.mxu1 %v1834_v17 }
  0x53   :  { %1485 = vmatprep.subr.bf16.mxu1 %v1745_v0 }
  0x56   :  { %1487 = vmatpush3.bf16.msra.mxu1 %v1839_v20 }
  0x57   :  { %1488 = vmatprep.subr.bf16.mxu1 %v1745_v0 }
  0x5a   :  { %1490 = vmatpush3.bf16.msra.mxu1 %v1848_v24 }
  0x5b   :  { %1491 = vmatprep.subr.bf16.mxu1 %v1745_v0 }
  0x5e   :  { %1493 = vmatpush3.bf16.msra.mxu1 %v1854_v27 }
  0x5f   :  { %1494 = vmatprep.subr.bf16.mxu1 %v1745_v0 }
  0x62   :  { %1496 = vmatpush3.bf16.msra.mxu1 %v1860_v30 }
  0x63   :  { %1497 = vmatprep.subr.bf16.mxu1 %v1745_v0 }
  0x66   :  { %1499 = vmatpush3.bf16.msra.mxu1 %v1866_v33 }
  0x67   :  { %1524 = vmatprep.subr.bf16.mxu1 %v1745_v0 }
 0x106   :  { %v1093_v40 = vpop.f32.mrb[0].mxu0 }
 0x107   :  { %v166_v41 = vpop.f32.mrb[1].mxu0  ;;  %v172_v54 = vadd.f32 %v1093_v40, %v1929_v42  ;;  %v810_v40 = vld [vmem:[#allocation5 + $0x68] sm:$0xff] }
 0x108   :  { %v167_v43 = vadd.f32 %v1929_v42, %v166_v41  ;;  %v1639_v41 = vpack.c.bf16 %v810_v40, %v809_v39 }
 0x10a   :  { %v1096_v48 = vpop.f32.mrb[2].mxu0 }
 0x10b   :  { %v176_v49 = vpop.f32.mrb[3].mxu0  ;;  %v182_v2 = vadd.f32 %v1096_v48, %v1929_v42 }
 0x10c   :  { %v177_v59 = vadd.f32 %v1929_v42, %v176_v49 }
 0x10e   :  { %v1950_v50 = vpop.f32.mrb[4].mxu0 }
 0x10f   :  { %v1952_v51 = vpop.f32.mrb[5].mxu0 }
 0x110   :  { %v187_v9 = vadd.f32 %v1929_v42, %v1952_v51  ;;  %v917_v51 = vld [vmem:[%s2069_s5] ss:$0 sm:$0xff] }
 0x112   :  { %v1954_v52 = vpop.f32.mrb[6].mxu0 }
 0x113   :  { %v1956_v53 = vpop.f32.mrb[7].mxu0 }
 0x114   :  { %v197_v31 = vadd.f32 %v1929_v42, %v1956_v53 }
 0x11c   :  { %v287_v44 = vpop.f32.mrb[0].mxu1 }
 0x11d   :  { %v291_v45 = vadd.f32 %v287_v44, %v167_v43  ;;  %v1137_v46 = vpop.f32.mrb[1].mxu1  ;;  %v811_v43 = vld [vmem:[#allocation5 + $0x70] sm:$0xff]  ;;  %v812_v44 = vld [vmem:[#allocation5 + $0x78] sm:$0xff] }
 0x11e   :  { %v202_v46 = vadd.f32 %v1954_v52, %v1929_v42 }
 0x11f   :  { %1653 = vtanh.f32 %v291_v45  ;;  %v1642_v45 = vpack.c.bf16 %v812_v44, %v811_v43 }
 0x129   :  { %v1654_v47 = vpop.eup %1653 }
 0x12a   :  { %1171 = vmatmul.mubr.f32.vlgmr.msra.gmra.mrb[8].mxu0 %v1654_v47 }
 0x12b   :  { %1502 = vmatpush3.bf16.msra.mxu0 %v1812_v5  ;;  %1240 = vmatprep.mubr.msk.f32.mxu0 %vm1746_vm0, %v1747_v1 }
 0x12c   :  { %1503 = vmatprep.subr.bf16.mxu0 %v1745_v0 }
 0x12f   :  { %1505 = vmatpush3.bf16.msra.mxu0 %v1815_v7 }
 0x130   :  { %1506 = vmatprep.subr.bf16.mxu0 %v1745_v0 }
 0x133   :  { %1508 = vmatpush3.bf16.msra.mxu0 %v1834_v17 }
 0x134   :  { %1509 = vmatprep.subr.bf16.mxu0 %v1745_v0 }
 0x137   :  { %1511 = vmatpush3.bf16.msra.mxu0 %v1839_v20 }
 0x138   :  { %1512 = vmatprep.subr.bf16.mxu0 %v1745_v0 }
 0x13b   :  { %1514 = vmatpush3.bf16.msra.mxu0 %v1848_v24 }
 0x13c   :  { %1515 = vmatprep.subr.bf16.mxu0 %v1745_v0 }
 0x13f   :  { %1517 = vmatpush3.bf16.msra.mxu0 %v1854_v27 }
 0x140   :  { %1518 = vmatprep.subr.bf16.mxu0 %v1745_v0 }
 0x143   :  { %1520 = vmatpush3.bf16.msra.mxu0 %v1860_v30 }
 0x144   :  { %1521 = vmatprep.subr.bf16.mxu0 %v1745_v0 }
 0x147   :  { %1523 = vmatpush3.bf16.msra.mxu0 %v1866_v33 }
 0x148   :  { %1548 = vmatprep.subr.bf16.mxu0 %v1745_v0 }
 0x1fd   :  { %v359_v55 = vpop.f32.mrb[8].mxu0 }
 0x1fe   :  { %v363_v56 = vadd.f32 %v359_v55, %v172_v54  ;;  %v1172_v57 = vpop.f32.mrb[9].mxu0 }
 0x200   :  { %1655 = vtanh.f32 %v363_v56 }
 0x20a   :  { %v1656_v58 = vpop.eup %1655 }
 0x20b   :  { %1206 = vmatmul.mubr.f32.vlgmr.msra.gmra.mrb[2].mxu1 %v1656_v58 }
 0x20c   :  { %1526 = vmatpush3.bf16.msra.mxu1 %v1812_v5  ;;  %1275 = vmatprep.mubr.msk.f32.mxu1 %vm1746_vm0, %v1747_v1 }
 0x20d   :  { %1527 = vmatprep.subr.bf16.mxu1 %v1745_v0 }
 0x210   :  { %1529 = vmatpush3.bf16.msra.mxu1 %v1815_v7 }
 0x211   :  { %1530 = vmatprep.subr.bf16.mxu1 %v1745_v0 }
 0x214   :  { %1532 = vmatpush3.bf16.msra.mxu1 %v1834_v17 }
 0x215   :  { %1533 = vmatprep.subr.bf16.mxu1 %v1745_v0 }
 0x218   :  { %1535 = vmatpush3.bf16.msra.mxu1 %v1839_v20 }
 0x219   :  { %1536 = vmatprep.subr.bf16.mxu1 %v1745_v0 }
 0x21c   :  { %1538 = vmatpush3.bf16.msra.mxu1 %v1848_v24 }
 0x21d   :  { %1539 = vmatprep.subr.bf16.mxu1 %v1745_v0 }
 0x220   :  { %1541 = vmatpush3.bf16.msra.mxu1 %v1854_v27 }
 0x221   :  { %1542 = vmatprep.subr.bf16.mxu1 %v1745_v0 }
 0x224   :  { %1544 = vmatpush3.bf16.msra.mxu1 %v1860_v30 }
 0x225   :  { %1545 = vmatprep.subr.bf16.mxu1 %v1745_v0 }
 0x228   :  { %1547 = vmatpush3.bf16.msra.mxu1 %v1866_v33 }
 0x229   :  { %1572 = vmatprep.subr.bf16.mxu1 %v1745_v0 }
 0x2de   :  { %v431_v60 = vpop.f32.mrb[2].mxu1 }
 0x2df   :  { %v435_v61 = vadd.f32 %v431_v60, %v177_v59  ;;  %v1207_v62 = vpop.f32.mrb[3].mxu1 }
 0x2e1   :  { %1657 = vtanh.f32 %v435_v61 }
 0x2eb   :  { %v1658_v63 = vpop.eup %1657 }
 0x2ec   :  { %1241 = vmatmul.mubr.f32.vlgmr.msra.gmra.mrb[10].mxu0 %v1658_v63 }
 0x2ed   :  { %1550 = vmatpush3.bf16.msra.mxu0 %v1812_v5  ;;  %1310 = vmatprep.mubr.msk.f32.mxu0 %vm1746_vm0, %v1747_v1 }
 0x2ee   :  { %1551 = vmatprep.subr.bf16.mxu0 %v1745_v0 }
 0x2f1   :  { %1553 = vmatpush3.bf16.msra.mxu0 %v1815_v7 }
 0x2f2   :  { %1554 = vmatprep.subr.bf16.mxu0 %v1745_v0 }
 0x2f5   :  { %1556 = vmatpush3.bf16.msra.mxu0 %v1834_v17 }
 0x2f6   :  { %1557 = vmatprep.subr.bf16.mxu0 %v1745_v0 }
 0x2f9   :  { %1559 = vmatpush3.bf16.msra.mxu0 %v1839_v20 }
 0x2fa   :  { %1560 = vmatprep.subr.bf16.mxu0 %v1745_v0 }
 0x2fd   :  { %1562 = vmatpush3.bf16.msra.mxu0 %v1848_v24 }
 0x2fe   :  { %1563 = vmatprep.subr.bf16.mxu0 %v1745_v0 }
 0x301   :  { %1565 = vmatpush3.bf16.msra.mxu0 %v1854_v27 }
 0x302   :  { %1566 = vmatprep.subr.bf16.mxu0 %v1745_v0 }
 0x305   :  { %1568 = vmatpush3.bf16.msra.mxu0 %v1860_v30 }
 0x306   :  { %1569 = vmatprep.subr.bf16.mxu0 %v1745_v0 }
 0x309   :  { %1571 = vmatpush3.bf16.msra.mxu0 %v1866_v33 }
 0x30a   :  { %1596 = vmatprep.subr.bf16.mxu0 %v1745_v0 }
 0x3bf   :  { %v503_v3 = vpop.f32.mrb[10].mxu0 }
 0x3c0   :  { %v507_v4 = vadd.f32 %v503_v3, %v182_v2  ;;  %v1242_v6 = vpop.f32.mrb[11].mxu0 }
 0x3c2   :  { %1659 = vtanh.f32 %v507_v4 }
 0x3cc   :  { %v1660_v8 = vpop.eup %1659 }
 0x3cd   :  { %1276 = vmatmul.mubr.f32.vlgmr.msra.gmra.mrb[4].mxu1 %v1660_v8 }
 0x3ce   :  { %1574 = vmatpush3.bf16.msra.mxu1 %v1812_v5  ;;  %1345 = vmatprep.mubr.msk.f32.mxu1 %vm1746_vm0, %v1747_v1 }
 0x3cf   :  { %1575 = vmatprep.subr.bf16.mxu1 %v1745_v0 }
 0x3d2   :  { %1577 = vmatpush3.bf16.msra.mxu1 %v1815_v7 }
 0x3d3   :  { %1578 = vmatprep.subr.bf16.mxu1 %v1745_v0 }
 0x3d6   :  { %1580 = vmatpush3.bf16.msra.mxu1 %v1834_v17 }
 0x3d7   :  { %1581 = vmatprep.subr.bf16.mxu1 %v1745_v0 }
 0x3da   :  { %1583 = vmatpush3.bf16.msra.mxu1 %v1839_v20 }
 0x3db   :  { %1584 = vmatprep.subr.bf16.mxu1 %v1745_v0 }
 0x3de   :  { %1586 = vmatpush3.bf16.msra.mxu1 %v1848_v24 }
 0x3df   :  { %1587 = vmatprep.subr.bf16.mxu1 %v1745_v0 }
 0x3e2   :  { %1589 = vmatpush3.bf16.msra.mxu1 %v1854_v27 }
 0x3e3   :  { %1590 = vmatprep.subr.bf16.mxu1 %v1745_v0 }
 0x3e6   :  { %1592 = vmatpush3.bf16.msra.mxu1 %v1860_v30 }
 0x3e7   :  { %1593 = vmatprep.subr.bf16.mxu1 %v1745_v0 }
 0x3ea   :  { %1595 = vmatpush3.bf16.msra.mxu1 %v1866_v33 }
 0x3eb   :  { %1620 = vmatprep.subr.bf16.mxu1 %v1745_v0 }
 0x4a0   :  { %v575_v10 = vpop.f32.mrb[4].mxu1 }
 0x4a1   :  { %v579_v11 = vadd.f32 %v575_v10, %v187_v9  ;;  %v1277_v12 = vpop.f32.mrb[5].mxu1 }
 0x4a3   :  { %1661 = vtanh.f32 %v579_v11 }
 0x4ad   :  { %v1662_v13 = vpop.eup %1661 }
 0x4ae   :  { %1311 = vmatmul.mubr.f32.vlgmr.msra.gmra.mrb[12].mxu0 %v1662_v13 }
 0x4af   :  { %1598 = vmatpush3.bf16.msra.mxu0 %v1812_v5  ;;  %1380 = vmatprep.mubr.msk.f32.mxu0 %vm1746_vm0, %v1747_v1  ;;  %v192_v5 = vadd.f32 %v1950_v50, %v1929_v42 }
 0x4b0   :  { %1599 = vmatprep.subr.bf16.mxu0 %v1745_v0 }
 0x4b3   :  { %1601 = vmatpush3.bf16.msra.mxu0 %v1815_v7 }
 0x4b4   :  { %1602 = vmatprep.subr.bf16.mxu0 %v1745_v0 }
 0x4b7   :  { %1604 = vmatpush3.bf16.msra.mxu0 %v1834_v17  ;;  %v797_v17 = vld [vmem:[#allocation5] sm:$0xff] }
 0x4b8   :  { %1605 = vmatprep.subr.bf16.mxu0 %v1745_v0 }
 0x4bb   :  { %1607 = vmatpush3.bf16.msra.mxu0 %v1839_v20  ;;  %v1621_v20 = vpack.c.bf16 %v798_v18, %v797_v17 }
 0x4bc   :  { %1608 = vmatprep.subr.bf16.mxu0 %v1745_v0 }
 0x4bf   :  { %1610 = vmatpush3.bf16.msra.mxu0 %v1848_v24  ;;  %v802_v24 = vld [vmem:[#allocation5 + $0x28] sm:$0xff] }
 0x4c0   :  { %1611 = vmatprep.subr.bf16.mxu0 %v1745_v0  ;;  %v1627_v25 = vpack.c.bf16 %v802_v24, %v801_v23 }
 0x4c3   :  { %1613 = vmatpush3.bf16.msra.mxu0 %v1854_v27  ;;  %v804_v27 = vld [vmem:[#allocation5 + $0x38] sm:$0xff] }
 0x4c4   :  { %1614 = vmatprep.subr.bf16.mxu0 %v1745_v0  ;;  %v1630_v28 = vpack.c.bf16 %v804_v27, %v803_v26 }
 0x4c7   :  { %1616 = vmatpush3.bf16.msra.mxu0 %v1860_v30 }
 0x4c8   :  { %1617 = vmatprep.subr.bf16.mxu0 %v1745_v0 }
 0x4cb   :  { %1619 = vmatpush3.bf16.msra.mxu0 %v1866_v33 }
 0x581   :  { %v647_v7 = vpop.f32.mrb[12].mxu0 }
 0x582   :  { %v651_v14 = vadd.f32 %v647_v7, %v192_v5  ;;  %v1312_v15 = vpop.f32.mrb[13].mxu0 }
 0x584   :  { %1663 = vtanh.f32 %v651_v14 }
 0x58e   :  { %v1664_v16 = vpop.eup %1663 }
 0x58f   :  { %1346 = vmatmul.mubr.f32.vlgmr.msra.gmra.mrb[6].mxu1 %v1664_v16 }
 0x590   :  { %1415 = vmatprep.mubr.msk.f32.mxu1 %vm1746_vm0, %v1747_v1  ;;  %1622 = vmatpush3.bf16.msra.mxu1 %v1621_v20  ;;  %v805_v1 = vld [vmem:[#allocation5 + $0x40] sm:$0xff] }
 0x591   :  { %1623 = vmatprep.subr.bf16.mxu1 %v1745_v0  ;;  %v1633_v30 = vpack.c.bf16 %v806_v29, %v805_v1 }
 0x594   :  { %1625 = vmatpush3.bf16.msra.mxu1 %v1624_v22 }
 0x595   :  { %1626 = vmatprep.subr.bf16.mxu1 %v1745_v0 }
 0x598   :  { %1628 = vmatpush3.bf16.msra.mxu1 %v1627_v25 }
 0x599   :  { %1629 = vmatprep.subr.bf16.mxu1 %v1745_v0 }
 0x59c   :  { %1631 = vmatpush3.bf16.msra.mxu1 %v1630_v28 }
 0x59d   :  { %1632 = vmatprep.subr.bf16.mxu1 %v1745_v0 }
 0x5a0   :  { %1634 = vmatpush3.bf16.msra.mxu1 %v1633_v30 }
 0x5a1   :  { %1635 = vmatprep.subr.bf16.mxu1 %v1745_v0 }
 0x5a4   :  { %1637 = vmatpush3.bf16.msra.mxu1 %v1636_v38 }
 0x5a5   :  { %1638 = vmatprep.subr.bf16.mxu1 %v1745_v0 }
 0x5a8   :  { %1640 = vmatpush3.bf16.msra.mxu1 %v1639_v41 }
 0x5a9   :  { %1641 = vmatprep.subr.bf16.mxu1 %v1745_v0 }
 0x5ac   :  { %1643 = vmatpush3.bf16.msra.mxu1 %v1642_v45 }
 0x662   :  { %v719_v32 = vpop.f32.mrb[6].mxu1 }
 0x663   :  { %v723_v33 = vadd.f32 %v719_v32, %v197_v31  ;;  %v1347_v34 = vpop.f32.mrb[7].mxu1 }
 0x665   :  { %1665 = vtanh.f32 %v723_v33 }
 0x66f   :  { %v1666_v35 = vpop.eup %1665 }
 0x670   :  { %1381 = vmatmul.mubr.f32.vlgmr.msra.gmra.mrb[14].mxu0 %v1666_v35 }
 0x743   :  { %v791_v47 = vpop.f32.mrb[14].mxu0 }
 0x744   :  { %v795_v48 = vadd.f32 %v791_v47, %v202_v46  ;;  %v1382_v49 = vpop.f32.mrb[15].mxu0 }
 0x746   :  { %1667 = vtanh.f32 %v795_v48 }
 0x750   :  { %v1668_v50 = vpop.eup %1667 }
 0x751   :  { %1416 = vmatmul.mubr.f32.vlgmr.msra.gmra.mrb[8].mxu1 %v1668_v50 }
 0x824   :  { %v886_v53 = vpop.f32.mrb[8].mxu1 }
 0x825   :  { %v887_v54 = vadd.f32 %v917_v51, %v886_v53  ;;  %v1417_v55 = vpop.f32.mrb[9].mxu1 }
 0x827   :  { %890 = vst [vmem:[#allocation7] sm:$0xff] %v887_v54 }
 0x828   :  { %1724 = shalt.err (!%p1721_p6)
}
 0x829   :  { %s1725_s25 = scalar_lea.hbm %s2070_s6, 128 }
 0x82a   :  { %p1726_p7 = scmp.ne.s32.totalorder %s2070_s6, %s1725_s25  ;;  %p1729_p8 = scmp.lt.u32.totalorder %s1725_s25, %s2070_s6 }
 0x82c   :  { %p1731_p9 = pnand %p1729_p8, %p1726_p7 }
 0x82e   :  { %1734 = shalt.err (!%p1731_p9)
}
 0x82f   :  { %900 = dma.vmem_to_hbm [thread:$0]  %s898_s4, 128, %s2070_s6, [#allocation4]  }
 0x830   :  { %1739 = dma.done.wait [#allocation4], 128  }
 0x831   :  { %1740 = vsyncadd [#allocation4], 4294967168 }
 0x832   :  { %904 = vsyncpa [#allocation3], 1 }
 0x833   :  { %905 = vsyncpa [#allocation6], 1 }
 0x834   :  { %906 = vsyncpa [#allocation4], 1 }

</bundles_post_ra>
